<compile_context>
chip_gen: v7x
topology: tpu7x:2x2x1
jax: 0.10.0
libtpu: 0.0.40
codegen_flags: <defaults>
</compile_context>

<pallas_src>
import jax
import jax.numpy as jnp
from jax.experimental import pallas as pl
from jax.experimental.pallas import tpu as pltpu


# ----------------------------- small helpers ---------------------------------

def _round_up(x: int, m: int) -> int:
    return ((x + m - 1) // m) * m


def _vmem_capacity_bytes() -> int:
    """Per-core VMEM capacity; conservative v7x default if the query fails."""
    try:
        return int(pltpu.get_tpu_info().vmem_capacity_bytes)
    except Exception:
        return 64 << 20


def _pick_divisor_tile(total: int, preferred: int, step: int) -> int:
    """Largest multiple of `step` that divides `total`, at most `preferred`."""
    t = min(total, max(step, (preferred // step) * step))
    while total % t != 0:
        t -= step
    return t


def _pick_batch_tile(n: int, row_stream_bytes: int, stream_budget: int):
    """Batch tile: multiple of 16 (bf16 packs 16 sublanes/vreg), <= 512 rows,
    bounded padded-row waste, fits the streaming VMEM budget, and >= 2 grid steps
    when possible so v7x's two TensorCores can both be used (harmless on 1-TC chips)."""
    if n <= 512:
        tm = _round_up(n, 16)
    else:
        tm = 512
        # bound padded-row waste to <= 1/8 of the padded batch
        while tm > 16 and (_round_up(n, tm) - n) * 8 > _round_up(n, tm):
            tm //= 2
    # shrink until the double-buffered x/out tiles fit the streaming budget
    while tm > 16 and 2 * tm * row_stream_bytes > stream_budget:
        tm = max(16, _round_up(tm // 2, 16))
    n_pad = _round_up(n, tm)
    # give the "parallel" batch axis at least 2 steps when there is enough work
    if n_pad // tm == 1 and n_pad >= 32:
        tm = _round_up(n_pad // 2, 16)
        n_pad = 2 * tm
    return tm, n_pad


def _resident_spec(shape, index_map, single_buffer: bool) -> pl.BlockSpec:
    """BlockSpec for a constant-index (VMEM-resident) operand."""
    if single_buffer:
        # Constant index_map -> no pipelining needed; single-buffer to halve VMEM.
        return pl.BlockSpec(shape, index_map, pipeline_mode=pl.Buffered(1))
    return pl.BlockSpec(shape, index_map)


# ------------------------------- kernels --------------------------------------

def _sigmoid_eup(h):
    # exp and approximate reciprocal both run on the EUP slot; keeps VALU free.
    return pl.reciprocal(1.0 + jnp.exp(-h), approx=True)


def _two_layer_kernel(x_ref, w1_ref, b1_ref, w2_ref, b2_ref, o_ref):
    """Fully VMEM-resident weights; one batch tile per grid step."""
    x = x_ref[...].astype(jnp.bfloat16)                 # no-op if already bf16
    h = jnp.dot(x, w1_ref[...], preferred_element_type=jnp.float32)
    h = h + b1_ref[...]                                 # f32 bias add (VPU)
    s = _sigmoid_eup(h)                                 # f32 sigmoid (EUP)
    out = jnp.dot(s.astype(jnp.bfloat16), w2_ref[...],
                  preferred_element_type=jnp.float32)
    o_ref[...] = (out + b2_ref[...]).astype(o_ref.dtype)


def _two_layer_kernel_hidden_tiled(x_ref, w1_ref, b1_ref, w2_ref, b2_ref,
                                   o_ref, acc_ref):
    """Fallback when weights don't fit VMEM: hidden dim tiled on an 'arbitrary'
    grid axis, fc2 partial products accumulated in an f32 VMEM scratch."""
    j = pl.program_id(1)

    @pl.when(j == 0)
    def _():
        acc_ref[...] = jnp.zeros_like(acc_ref)

    x = x_ref[...].astype(jnp.bfloat16)
    h = jnp.dot(x, w1_ref[...], preferred_element_type=jnp.float32) + b1_ref[...]
    s = _sigmoid_eup(h)
    acc_ref[...] += jnp.dot(s.astype(jnp.bfloat16), w2_ref[...],
                            preferred_element_type=jnp.float32)

    @pl.when(j == pl.num_programs(1) - 1)
    def _():
        o_ref[...] = (acc_ref[...] + b2_ref[...]).astype(o_ref.dtype)


# ------------------------------ host wrappers ----------------------------------

def prepare_params(w1, b1, w2, b2):
    """Pad to 128-lane multiples and cast weights to bf16 ONCE (hoisted out of the
    per-call path). Zero padding keeps the math exact: padded hidden units feed
    exactly-zero rows of w2, padded classes get zero weight/bias and are sliced off.
    NOTE: any non-zero padding here would silently corrupt the logits."""
    d, hidden = w1.shape
    hidden2, num_classes = w2.shape
    assert hidden == hidden2, "w1/w2 hidden dims disagree"
    d_pad = _round_up(d, 128)
    h_pad = _round_up(hidden, 128)
    c_pad = _round_up(num_classes, 128)

    w1_p = jnp.zeros((d_pad, h_pad), jnp.bfloat16).at[:d, :hidden].set(
        w1.astype(jnp.bfloat16))
    b1_p = jnp.zeros((1, h_pad), jnp.float32).at[:, :hidden].set(
        jnp.reshape(b1, (1, hidden)).astype(jnp.float32))
    w2_p = jnp.zeros((h_pad, c_pad), jnp.bfloat16).at[:hidden, :num_classes].set(
        w2.astype(jnp.bfloat16))
    b2_p = jnp.zeros((1, c_pad), jnp.float32).at[:, :num_classes].set(
        jnp.reshape(b2, (1, num_classes)).astype(jnp.float32))

    return dict(w1=w1_p, b1=b1_p, w2=w2_p, b2=b2_p,
                input_dim=d, hidden_size=hidden, num_classes=num_classes)


def two_layer_net_apply(x_nchw, params, *, force_hidden_tiling=False):
    """Forward pass. x_nchw: (N, C, H, W). Returns (N, num_classes) f32 logits.
    Matches TwoLayerNet.forward: reshape -> fc1 -> sigmoid -> fc2 (bf16 MXU inputs,
    f32 accumulation)."""
    w1_p, b1_p, w2_p, b2_p = params["w1"], params["b1"], params["w2"], params["b2"]
    d = params["input_dim"]
    num_classes = params["num_classes"]
    d_pad, h_pad = w1_p.shape
    c_pad = w2_p.shape[1]

    n = x_nchw.shape[0]
    x_flat = jnp.reshape(x_nchw, (n, -1)).astype(jnp.float32)  # torch.reshape(x,(n,-1))
    assert x_flat.shape[1] == d, "input feature dim mismatch"

    vmem_cap = _vmem_capacity_bytes()
    budget = (vmem_cap * 3) // 4  # headroom for compiler scratch / semaphores

    # Resident footprint of the fully-resident kernel (single-buffered weights);
    # bias blocks pad to 8 sublanes in VMEM.
    resident_a = (d_pad * h_pad + h_pad * c_pad) * 2 + 8 * (h_pad + c_pad) * 4

    # Batch tile (assume bf16 x for the budget estimate; conservative enough).
    row_stream_bytes = d_pad * 2 + c_pad * 4
    stream_budget = max(budget - resident_a, 8 << 20)
    tm, n_pad = _pick_batch_tile(n, row_stream_bytes, stream_budget)

    # Pad/cast x in the wrapper only when actually needed; otherwise stream it as-is
    # (in-kernel bf16 cast) to avoid an extra full HBM read+write outside the kernel.
    if (n != n_pad) or (d != d_pad):
        x_in = jnp.zeros((n_pad, d_pad), jnp.bfloat16).at[:n, :d].set(
            x_flat.astype(jnp.bfloat16))
    else:
        x_in = x_flat
    x_bytes = x_in.dtype.itemsize

    use_hidden_tiling = force_hidden_tiling or (
        resident_a + 2 * tm * (d_pad * x_bytes + c_pad * 4) > budget)

    cost = pl.CostEstimate(
        flops=2 * n_pad * (d_pad * h_pad + h_pad * c_pad),
        transcendentals=2 * n_pad * h_pad,  # exp + approx reciprocal (EUP)
        bytes_accessed=(n_pad * d_pad * x_bytes
                        + (d_pad * h_pad + h_pad * c_pad) * 2
                        + (h_pad + c_pad) * 4
                        + n_pad * c_pad * 4),
    )

    if not use_hidden_tiling:
        grid = (n_pad // tm,)
        vmem_limit = (resident_a
                      + 2 * tm * (d_pad * x_bytes + c_pad * 4)  # double-buffered x/out
                      + (4 << 20))
        vmem_limit = min(max(vmem_limit, 16 << 20), vmem_cap)

        def _call(single_buffer):
            return pl.pallas_call(
                _two_layer_kernel,
                out_shape=jax.ShapeDtypeStruct((n_pad, c_pad), jnp.float32),
                grid=grid,
                in_specs=[
                    pl.BlockSpec((tm, d_pad), lambda i: (i, 0)),      # x: streamed
                    _resident_spec((d_pad, h_pad), lambda i: (0, 0), single_buffer),
                    _resident_spec((1, h_pad), lambda i: (0, 0), single_buffer),
                    _resident_spec((h_pad, c_pad), lambda i: (0, 0), single_buffer),
                    _resident_spec((1, c_pad), lambda i: (0, 0), single_buffer),
                ],
                out_specs=pl.BlockSpec((tm, c_pad), lambda i: (i, 0)),  # lane-dense
                compiler_params=pltpu.CompilerParams(
                    dimension_semantics=("parallel",),
                    vmem_limit_bytes=int(vmem_limit),
                ),
                cost_estimate=cost,
            )(x_in, w1_p, b1_p, w2_p, b2_p)

        try:
            out_pad = _call(True)
        except Exception:
            # Fallback for Pallas versions that reject single-buffered inputs.
            out_pad = _call(False)
    else:
        th = _pick_divisor_tile(h_pad, preferred=512, step=128)
        grid = (n_pad // tm, h_pad // th)
        vmem_limit = (2 * tm * d_pad * x_bytes                       # x tile
                      + 2 * (d_pad * th * 2 + 8 * th * 4 + th * c_pad * 2)  # w1/b1/w2
                      + 2 * tm * c_pad * 4                           # out tile
                      + tm * c_pad * 4                               # acc scratch
                      + 8 * c_pad * 4                                # b2
                      + (4 << 20))
        vmem_limit = min(max(vmem_limit, 16 << 20), vmem_cap)

        def _call(single_buffer):
            return pl.pallas_call(
                _two_layer_kernel_hidden_tiled,
                out_shape=jax.ShapeDtypeStruct((n_pad, c_pad), jnp.float32),
                grid=grid,
                in_specs=[
                    pl.BlockSpec((tm, d_pad), lambda i, j: (i, 0)),   # x
                    pl.BlockSpec((d_pad, th), lambda i, j: (0, j)),   # w1 column block
                    pl.BlockSpec((1, th), lambda i, j: (0, j)),       # b1 block
                    pl.BlockSpec((th, c_pad), lambda i, j: (j, 0)),   # w2 row block
                    _resident_spec((1, c_pad), lambda i, j: (0, 0), single_buffer),
                ],
                out_specs=pl.BlockSpec((tm, c_pad), lambda i, j: (i, 0)),
                scratch_shapes=[pltpu.VMEM((tm, c_pad), jnp.float32)],
                compiler_params=pltpu.CompilerParams(
                    dimension_semantics=("parallel", "arbitrary"),
                    vmem_limit_bytes=int(vmem_limit),
                ),
                cost_estimate=cost,
            )(x_in, w1_p, b1_p, w2_p, b2_p)

        try:
            out_pad = _call(True)
        except Exception:
            out_pad = _call(False)

    return out_pad[:n, :num_classes]


def two_layer_net(x_nchw, w1, b1, w2, b2):
    """Convenience one-shot API (prepares params on every call)."""
    return two_layer_net_apply(x_nchw, prepare_params(w1, b1, w2, b2))


def init_params(key, input_dim, hidden_size, num_classes):
    """Deterministic init mimicking nn.Linear default (uniform ±1/sqrt(fan_in))."""
    k1, k2, k3, k4 = jax.random.split(key, 4)
    bound1 = 1.0 / jnp.sqrt(input_dim)
    bound2 = 1.0 / jnp.sqrt(hidden_size)
    w1 = jax.random.uniform(k1, (input_dim, hidden_size), jnp.float32, -bound1, bound1)
    b1 = jax.random.uniform(k2, (hidden_size,), jnp.float32, -bound1, bound1)
    w2 = jax.random.uniform(k3, (hidden_size, num_classes), jnp.float32, -bound2, bound2)
    b2 = jax.random.uniform(k4, (num_classes,), jnp.float32, -bound2, bound2)
    return w1, b1, w2, b2


if __name__ == "__main__":
    # Small shapes: batch=2, channels=4, spatial=16 -> input_dim = 4*16*16 = 1024
    N, C, H, W = 2, 4, 16, 16
    input_dim = C * H * W
    hidden_size = 32
    num_classes = 10

    key = jax.random.PRNGKey(0)
    kx, kp = jax.random.split(key)
    x = jax.random.normal(kx, (N, C, H, W), jnp.float32)
    w1, b1, w2, b2 = init_params(kp, input_dim, hidden_size, num_classes)

    params = prepare_params(w1, b1, w2, b2)   # weight pad/cast hoisted out of per-call path

    out = jax.block_until_ready(two_layer_net_apply(x, params))

    # Pure-JAX f32 reference (original module semantics). Kernel uses bf16 MXU
    # inputs with f32 accumulation, so tolerance is loosened accordingly.
    x_flat = x.reshape(N, -1)
    ref = jax.nn.sigmoid(x_flat @ w1 + b1) @ w2 + b2
    assert out.shape == (N, num_classes)
    assert jnp.allclose(out, ref, atol=3e-2, rtol=3e-2), (
        f"max abs err {jnp.max(jnp.abs(out - ref))}")

    # Also exercise the hidden-tiled fallback kernel (used when weights exceed VMEM).
    out_b = jax.block_until_ready(
        two_layer_net_apply(x, params, force_hidden_tiling=True))
    assert jnp.allclose(out_b, ref, atol=3e-2, rtol=3e-2), (
        f"max abs err (hidden-tiled) {jnp.max(jnp.abs(out_b - ref))}")

    print("KERNEL_OK")
</pallas_src>

<mosaic_0001>
module attributes {stable_mosaic.version = 11 : i64} {
  func.func @_two_layer_kernel(%arg0: i32, %arg1: memref<16x1024xbf16, #tpu.memory_space<vmem>>, %arg2: memref<1024x128xbf16, #tpu.memory_space<vmem>>, %arg3: memref<1x128xf32, #tpu.memory_space<vmem>>, %arg4: memref<128x128xbf16, #tpu.memory_space<vmem>>, %arg5: memref<1x128xf32, #tpu.memory_space<vmem>>, %arg6: memref<16x128xf32, #tpu.memory_space<vmem>>) attributes {dimension_semantics = [#tpu.dimension_semantics<parallel>], iteration_bounds = array<i64: 1>, scalar_prefetch = 0 : i64, scratch_operands = 0 : i64, tpu.core_type = #tpu.core_type<tc>, window_params = [{transform_indices = @transform_0, window_bounds = array<i64: 16, 1024>}, {pipeline_mode = #tpu.pipeline_mode<synchronous>, transform_indices = @transform_1, window_bounds = array<i64: 1024, 128>}, {pipeline_mode = #tpu.pipeline_mode<synchronous>, transform_indices = @transform_2, window_bounds = array<i64: 1, 128>}, {pipeline_mode = #tpu.pipeline_mode<synchronous>, transform_indices = @transform_3, window_bounds = array<i64: 128, 128>}, {pipeline_mode = #tpu.pipeline_mode<synchronous>, transform_indices = @transform_4, window_bounds = array<i64: 1, 128>}, {transform_indices = @transform_5, window_bounds = array<i64: 16, 128>}]} {
    %c0 = arith.constant 0 : index
    %c0_0 = arith.constant 0 : index
    %0 = vector.load %arg1[%c0, %c0_0] : memref<16x1024xbf16, #tpu.memory_space<vmem>>, vector<16x1024xbf16>
    %c0_1 = arith.constant 0 : index
    %c0_2 = arith.constant 0 : index
    %1 = vector.load %arg2[%c0_1, %c0_2] : memref<1024x128xbf16, #tpu.memory_space<vmem>>, vector<1024x128xbf16>
    %cst = arith.constant dense<0.000000e+00> : vector<16x128xf32>
    %2 = tpu.matmul %0, %1, %cst {dimension_numbers = #tpu.dot_dimension_numbers<[1], [0], [0], [1], [0, 0, 1, 1], [], []>} : vector<16x1024xbf16>, vector<1024x128xbf16>, vector<16x128xf32> -> vector<16x128xf32>
    %c0_3 = arith.constant 0 : index
    %c0_4 = arith.constant 0 : index
    %3 = vector.load %arg3[%c0_3, %c0_4] : memref<1x128xf32, #tpu.memory_space<vmem>>, vector<1x128xf32>
    %4 = vector.broadcast %3 : vector<1x128xf32> to vector<16x128xf32>
    %5 = arith.addf %2, %4 : vector<16x128xf32>
    %cst_5 = arith.constant 0.000000e+00 : f32
    %6 = vector.broadcast %cst_5 : f32 to vector<16x128xf32>
    %7 = arith.subf %6, %5 : vector<16x128xf32>
    %8 = math.exp %7 : vector<16x128xf32>
    %cst_6 = arith.constant 1.000000e+00 : f32
    %9 = vector.broadcast %cst_6 : f32 to vector<16x128xf32>
    %10 = arith.addf %9, %8 : vector<16x128xf32>
    %11 = tpu.reciprocal %10 {approx = true} : vector<16x128xf32> -> vector<16x128xf32>
    %12 = arith.truncf %11 : vector<16x128xf32> to vector<16x128xbf16>
    %c0_7 = arith.constant 0 : index
    %c0_8 = arith.constant 0 : index
    %13 = vector.load %arg4[%c0_7, %c0_8] : memref<128x128xbf16, #tpu.memory_space<vmem>>, vector<128x128xbf16>
    %cst_9 = arith.constant dense<0.000000e+00> : vector<16x128xf32>
    %14 = tpu.matmul %12, %13, %cst_9 {dimension_numbers = #tpu.dot_dimension_numbers<[1], [0], [0], [1], [0, 0, 1, 1], [], []>} : vector<16x128xbf16>, vector<128x128xbf16>, vector<16x128xf32> -> vector<16x128xf32>
    %c0_10 = arith.constant 0 : index
    %c0_11 = arith.constant 0 : index
    %15 = vector.load %arg5[%c0_10, %c0_11] : memref<1x128xf32, #tpu.memory_space<vmem>>, vector<1x128xf32>
    %16 = vector.broadcast %15 : vector<1x128xf32> to vector<16x128xf32>
    %17 = arith.addf %14, %16 : vector<16x128xf32>
    %c0_12 = arith.constant 0 : index
    %c0_13 = arith.constant 0 : index
    %18 = vector.load %arg6[%c0_12, %c0_13] : memref<16x128xf32, #tpu.memory_space<vmem>>, vector<16x128xf32>
    tpu.vector_store %arg6[%c0_12, %c0_13], %17 {strides = array<i32>} : memref<16x128xf32, #tpu.memory_space<vmem>>, vector<16x128xf32>,
    return
  }
  func.func @transform_0(%arg0: i32) -> (i32, i32) {
    %c0_i32 = arith.constant 0 : i32
    %c0_i32_0 = arith.constant 0 : i32
    return %arg0, %c0_i32 : i32, i32
  }
  func.func @transform_1(%arg0: i32) -> (i32, i32) {
    %c0_i32 = arith.constant 0 : i32
    %c0_i32_0 = arith.constant 0 : i32
    %c0_i32_1 = arith.constant 0 : i32
    return %c0_i32, %c0_i32_0 : i32, i32
  }
  func.func @transform_2(%arg0: i32) -> (i32, i32) {
    %c0_i32 = arith.constant 0 : i32
    %c0_i32_0 = arith.constant 0 : i32
    %c0_i32_1 = arith.constant 0 : i32
    return %c0_i32, %c0_i32_0 : i32, i32
  }
  func.func @transform_3(%arg0: i32) -> (i32, i32) {
    %c0_i32 = arith.constant 0 : i32
    %c0_i32_0 = arith.constant 0 : i32
    %c0_i32_1 = arith.constant 0 : i32
    return %c0_i32, %c0_i32_0 : i32, i32
  }
  func.func @transform_4(%arg0: i32) -> (i32, i32) {
    %c0_i32 = arith.constant 0 : i32
    %c0_i32_0 = arith.constant 0 : i32
    %c0_i32_1 = arith.constant 0 : i32
    return %c0_i32, %c0_i32_0 : i32, i32
  }
  func.func @transform_5(%arg0: i32) -> (i32, i32) {
    %c0_i32 = arith.constant 0 : i32
    %c0_i32_0 = arith.constant 0 : i32
    return %arg0, %c0_i32 : i32, i32
  }
}

module attributes {stable_mosaic.version = 11 : i64} {
  func.func @_two_layer_kernel(%arg0: i32, %arg1: memref<16x1024xbf16, #tpu.memory_space<vmem>>, %arg2: memref<1024x128xbf16, #tpu.memory_space<vmem>>, %arg3: memref<1x128xf32, #tpu.memory_space<vmem>>, %arg4: memref<128x128xbf16, #tpu.memory_space<vmem>>, %arg5: memref<1x128xf32, #tpu.memory_space<vmem>>, %arg6: memref<16x128xf32, #tpu.memory_space<vmem>>) attributes {dimension_semantics = [#tpu.dimension_semantics<parallel>], iteration_bounds = array<i64: 1>, scalar_prefetch = 0 : i64, scratch_operands = 0 : i64, tpu.core_type = #tpu.core_type<tc>, window_params = [{transform_indices = @transform_0, window_bounds = array<i64: 16, 1024>}, {pipeline_mode = #tpu.pipeline_mode<synchronous>, transform_indices = @transform_1, window_bounds = array<i64: 1024, 128>}, {pipeline_mode = #tpu.pipeline_mode<synchronous>, transform_indices = @transform_2, window_bounds = array<i64: 1, 128>}, {pipeline_mode = #tpu.pipeline_mode<synchronous>, transform_indices = @transform_3, window_bounds = array<i64: 128, 128>}, {pipeline_mode = #tpu.pipeline_mode<synchronous>, transform_indices = @transform_4, window_bounds = array<i64: 1, 128>}, {transform_indices = @transform_5, window_bounds = array<i64: 16, 128>}]} {
    %c0 = arith.constant 0 : index
    %c0_0 = arith.constant 0 : index
    %0 = vector.load %arg1[%c0, %c0_0] : memref<16x1024xbf16, #tpu.memory_space<vmem>>, vector<16x1024xbf16>
    %c0_1 = arith.constant 0 : index
    %c0_2 = arith.constant 0 : index
    %1 = vector.load %arg2[%c0_1, %c0_2] : memref<1024x128xbf16, #tpu.memory_space<vmem>>, vector<1024x128xbf16>
    %cst = arith.constant dense<0.000000e+00> : vector<16x128xf32>
    %2 = tpu.matmul %0, %1, %cst {dimension_numbers = #tpu.dot_dimension_numbers<[1], [0], [0], [1], [0, 0, 1, 1], [], []>} : vector<16x1024xbf16>, vector<1024x128xbf16>, vector<16x128xf32> -> vector<16x128xf32>
    %c0_3 = arith.constant 0 : index
    %c0_4 = arith.constant 0 : index
    %3 = vector.load %arg3[%c0_3, %c0_4] : memref<1x128xf32, #tpu.memory_space<vmem>>, vector<1x128xf32>
    %4 = vector.broadcast %3 : vector<1x128xf32> to vector<16x128xf32>
    %5 = arith.addf %2, %4 : vector<16x128xf32>
    %cst_5 = arith.constant 0.000000e+00 : f32
    %6 = vector.broadcast %cst_5 : f32 to vector<16x128xf32>
    %7 = arith.subf %6, %5 : vector<16x128xf32>
    %8 = math.exp %7 : vector<16x128xf32>
    %cst_6 = arith.constant 1.000000e+00 : f32
    %9 = vector.broadcast %cst_6 : f32 to vector<16x128xf32>
    %10 = arith.addf %9, %8 : vector<16x128xf32>
    %11 = tpu.reciprocal %10 {approx = true} : vector<16x128xf32> -> vector<16x128xf32>
    %12 = arith.truncf %11 : vector<16x128xf32> to vector<16x128xbf16>
    %c0_7 = arith.constant 0 : index
    %c0_8 = arith.constant 0 : index
    %13 = vector.load %arg4[%c0_7, %c0_8] : memref<128x128xbf16, #tpu.memory_space<vmem>>, vector<128x128xbf16>
    %cst_9 = arith.constant dense<0.000000e+00> : vector<16x128xf32>
    %14 = tpu.matmul %12, %13, %cst_9 {dimension_numbers = #tpu.dot_dimension_numbers<[1], [0], [0], [1], [0, 0, 1, 1], [], []>} : vector<16x128xbf16>, vector<128x128xbf16>, vector<16x128xf32> -> vector<16x128xf32>
    %c0_10 = arith.constant 0 : index
    %c0_11 = arith.constant 0 : index
    %15 = vector.load %arg5[%c0_10, %c0_11] : memref<1x128xf32, #tpu.memory_space<vmem>>, vector<1x128xf32>
    %16 = vector.broadcast %15 : vector<1x128xf32> to vector<16x128xf32>
    %17 = arith.addf %14, %16 : vector<16x128xf32>
    %c0_12 = arith.constant 0 : index
    %c0_13 = arith.constant 0 : index
    %18 = vector.load %arg6[%c0_12, %c0_13] : memref<16x128xf32, #tpu.memory_space<vmem>>, vector<16x128xf32>
    tpu.vector_store %arg6[%c0_12, %c0_13], %17 {strides = array<i32>} : memref<16x128xf32, #tpu.memory_space<vmem>>, vector<16x128xf32>,
    return
  }
  func.func @transform_0(%arg0: i32) -> (i32, i32) {
    %c0_i32 = arith.constant 0 : i32
    %c0_i32_0 = arith.constant 0 : i32
    return %arg0, %c0_i32 : i32, i32
  }
  func.func @transform_1(%arg0: i32) -> (i32, i32) {
    %c0_i32 = arith.constant 0 : i32
    %c0_i32_0 = arith.constant 0 : i32
    %c0_i32_1 = arith.constant 0 : i32
    return %c0_i32, %c0_i32_0 : i32, i32
  }
  func.func @transform_2(%arg0: i32) -> (i32, i32) {
    %c0_i32 = arith.constant 0 : i32
    %c0_i32_0 = arith.constant 0 : i32
    %c0_i32_1 = arith.constant 0 : i32
    return %c0_i32, %c0_i32_0 : i32, i32
  }
  func.func @transform_3(%arg0: i32) -> (i32, i32) {
    %c0_i32 = arith.constant 0 : i32
    %c0_i32_0 = arith.constant 0 : i32
    %c0_i32_1 = arith.constant 0 : i32
    return %c0_i32, %c0_i32_0 : i32, i32
  }
  func.func @transform_4(%arg0: i32) -> (i32, i32) {
    %c0_i32 = arith.constant 0 : i32
    %c0_i32_0 = arith.constant 0 : i32
    %c0_i32_1 = arith.constant 0 : i32
    return %c0_i32, %c0_i32_0 : i32, i32
  }
  func.func @transform_5(%arg0: i32) -> (i32, i32) {
    %c0_i32 = arith.constant 0 : i32
    %c0_i32_0 = arith.constant 0 : i32
    return %arg0, %c0_i32 : i32, i32
  }
}

</mosaic_0001>

<bundles_post_ra>
// kernel: tpu_custom_call.1
= control target key start
LH: loop header
LB: loop body
LE: loop exit
PB: predicated region body
PF: predicated region fallthrough
CT: control target
= control target key end

     0   :  { %10 = vsyncpa [#allocation3], 0  ;;  %s1424_s0 = inlined_call_operand.hbm [shape: bf16[16,1024], index: 0, kind: input, shape index: {}]   ;;  %s1425_s1 = inlined_call_operand.hbm [shape: bf16[1024,128], index: 1, kind: input, shape index: {}]   ;;  %s1426_s2 = inlined_call_operand.vmem [shape: f32[1,128], index: 2, kind: input, shape index: {}]   ;;  %s1427_s3 = inlined_call_operand.hbm [shape: bf16[128,128], index: 3, kind: input, shape index: {}]   ;;  %s1428_s4 = inlined_call_operand.vmem [shape: f32[1,128], index: 4, kind: input, shape index: {}]   ;;  %s1429_s5 = inlined_call_operand.hbm [shape: f32[16,128], index: 5, kind: output, shape index: {}]  }
   0x1   :  { %11 = vsyncpa [#allocation6], 0 }
   0x2   :  { %12 = vsyncpa [#allocation4], 0  ;;  %s1322_s18 = smov [#allocation5]   ;;  %s1228_s22 = scalar_lea.hbm %s1425_s1, 8192 }
   0x3   :  { %s30_s19 = sshll.u32 %s1322_s18, 4  ;;  %p1229_p0 = scmp.ne.s32.totalorder %s1425_s1, %s1228_s22  ;;  %s31_s19 = int_to_ptr.vmem [resolvable:$true] %s30_s19 }
   0x4   :  { %p1232_p1 = scmp.lt.u32.totalorder %s1228_s22, %s1425_s1 }
   0x6   :  { %p1234_p2 = pnand %p1232_p1, %p1229_p0 }
   0x8   :  { %1237 = shalt.err (!%p1234_p2)
}
   0x9   :  { %s1238_s27 = scalar_lea.vmem %s31_s19, 8192  ;;  %p1243_p4 = scmp.lt.s32.totalorder %s31_s19, %s31_s19 }
   0xa   :  { %p1239_p3 = scmp.ne.s32.totalorder %s31_s19, %s1238_s27  ;;  %p1244_p5 = scmp.lt.s32.totalorder %s1238_s27, %s1238_s27 }
   0xc   :  { %p1245_p6 = por %p1244_p5, %p1243_p4 }
   0xe   :  { %p1246_p7 = pnand %p1245_p6, %p1239_p3 }
  0x10   :  { %1249 = shalt.err (!%p1246_p7)
}
  0x11   :  { %s1323_s28 = smov 64   ;;  %s1324_s29 = smov 4  }
  0x12   :  { %36 = dma.hbm_to_vmem [thread:$0]  %s1425_s1, 8192, %s31_s19, [#allocation6], %s1323_s28, %s1323_s28, %s1324_s29  }
  0x13   :  { %s1325_s7 = smov [#allocation2]   ;;  %s1250_s11 = scalar_lea.hbm %s1424_s0, 1024 }
  0x14   :  { %s18_s8 = sshll.u32 %s1325_s7, 4  ;;  %p1251_p8 = scmp.ne.s32.totalorder %s1424_s0, %s1250_s11  ;;  %s19_s8 = int_to_ptr.vmem [resolvable:$true] %s18_s8 }
  0x15   :  { %p1254_p9 = scmp.lt.u32.totalorder %s1250_s11, %s1424_s0 }
  0x17   :  { %p1256_p10 = pnand %p1254_p9, %p1251_p8 }
  0x19   :  { %1259 = shalt.err (!%p1256_p10)
}
  0x1a   :  { %s1260_s16 = scalar_lea.vmem %s19_s8, 1024  ;;  %p1265_p12 = scmp.lt.s32.totalorder %s19_s8, %s19_s8 }
  0x1b   :  { %p1261_p11 = scmp.ne.s32.totalorder %s19_s8, %s1260_s16  ;;  %p1266_p13 = scmp.lt.s32.totalorder %s1260_s16, %s1260_s16 }
  0x1d   :  { %p1267_p0 = por %p1266_p13, %p1265_p12 }
  0x1f   :  { %p1268_p1 = pnand %p1267_p0, %p1261_p11 }
  0x21   :  { %1271 = shalt.err (!%p1268_p1)
}
  0x22   :  { %s1326_s1 = smov 512   ;;  %s1327_s17 = smov 32  }
  0x23   :  { %24 = dma.hbm_to_vmem [thread:$0]  %s1424_s0, 1024, %s19_s8, [#allocation3], %s1326_s1, %s1326_s1, %s1327_s17  }
  0x24   :  { %s1328_s20 = smov [#allocation7]   ;;  %s1272_s24 = scalar_lea.hbm %s1427_s3, 1024 }
  0x25   :  { %s44_s21 = sshll.u32 %s1328_s20, 4  ;;  %p1273_p2 = scmp.ne.s32.totalorder %s1427_s3, %s1272_s24  ;;  %s45_s21 = int_to_ptr.vmem [resolvable:$true] %s44_s21 }
  0x26   :  { %p1276_p3 = scmp.lt.u32.totalorder %s1272_s24, %s1427_s3 }
  0x28   :  { %p1278_p4 = pnand %p1276_p3, %p1273_p2 }
  0x2a   :  { %1281 = shalt.err (!%p1278_p4)
}
  0x2b   :  { %s1282_s6 = scalar_lea.vmem %s45_s21, 1024  ;;  %p1287_p6 = scmp.lt.s32.totalorder %s45_s21, %s45_s21 }
  0x2c   :  { %p1283_p5 = scmp.ne.s32.totalorder %s45_s21, %s1282_s6  ;;  %p1288_p7 = scmp.lt.s32.totalorder %s1282_s6, %s1282_s6 }
  0x2e   :  { %p1289_p8 = por %p1288_p7, %p1287_p6 }
  0x30   :  { %p1290_p9 = pnand %p1289_p8, %p1283_p5 }
  0x32   :  { %1293 = shalt.err (!%p1290_p9)
}
  0x33   :  { %50 = dma.hbm_to_vmem [thread:$0]  %s1427_s3, 1024, %s45_s21, [#allocation6], %s1323_s28, %s1323_s28, %s1324_s29  }
  0x34   :  { %1316 = dma.done.wait [#allocation3], 1024  }
  0x35   :  { %1317 = vsyncadd [#allocation3], 4294966272 }
  0x36   :  { %1318 = dma.done.wait [#allocation6], 9216  }
  0x37   :  { %1319 = vsyncadd [#allocation6], 4294958080  ;;  %v1148_v0 = vld [vmem:[#allocation5 + $0x40] sm:$0xff]   ;;  %v1152_v4 = vld [vmem:[#allocation5 + $0x48] sm:$0xff]   ;;  %vm1330_vm0 = vmmov 0   ;;  %s1331_s8 = smov [#allocation8]  }
  0x38   :  { %v1149_v1 = vld [vmem:[#allocation5 + $0xc0] sm:$0xff]   ;;  %1019 = vmatprep.subr.bf16.mxu0 %v1148_v0  ;;  %v1153_v5 = vld [vmem:[#allocation5 + $0xc8] sm:$0xff]   ;;  %v1156_v8 = vld [vmem:[#allocation5 + $0x50] sm:$0xff]   ;;  %s924_s9 = sshll.u32 %s1331_s8, 4  ;;  %s925_s9 = int_to_ptr.vmem [resolvable:$true] %s924_s9 }
  0x39   :  { %v1150_v2 = vld [vmem:[#allocation5] sm:$0xff]   ;;  %1041 = vmatprep.subr.bf16.mxu1 %v1149_v1  ;;  %v1154_v6 = vld [vmem:[#allocation5 + $0x8] sm:$0xff]   ;;  %v1157_v9 = vld [vmem:[#allocation5 + $0xd0] sm:$0xff]   ;;  %s1294_s10 = scalar_lea.vmem %s925_s9, 256  ;;  %p1299_p11 = scmp.lt.s32.totalorder %s925_s9, %s925_s9 }
  0x3a   :  { %v1151_v3 = vld [vmem:[#allocation5 + $0x80] sm:$0xff]   ;;  %1020 = vmatpush3.bf16.msra.mxu0 %v1150_v2  ;;  %v1155_v7 = vld [vmem:[#allocation5 + $0x88] sm:$0xff]   ;;  %v1158_v10 = vld [vmem:[#allocation5 + $0x10] sm:$0xff]   ;;  %p1295_p10 = scmp.ne.s32.totalorder %s925_s9, %s1294_s10  ;;  %p1300_p12 = scmp.lt.s32.totalorder %s1294_s10, %s1294_s10 }
  0x3b   :  { %1042 = vmatpush3.bf16.msra.mxu1 %v1151_v3  ;;  %1021 = vmatprep.subr.bf16.mxu0 %v1152_v4  ;;  %v1159_v11 = vld [vmem:[#allocation5 + $0x90] sm:$0xff]   ;;  %v1160_v12 = vld [vmem:[#allocation5 + $0x58] sm:$0xff]   ;;  %v1164_v16 = vld [vmem:[#allocation5 + $0x60] sm:$0xff]  }
  0x3c   :  { %1043 = vmatprep.subr.bf16.mxu1 %v1153_v5  ;;  %v1161_v13 = vld [vmem:[#allocation5 + $0xd8] sm:$0xff]   ;;  %v1165_v17 = vld [vmem:[#allocation5 + $0xe0] sm:$0xff]   ;;  %v1168_v20 = vld [vmem:[#allocation5 + $0x68] sm:$0xff]   ;;  %p1301_p13 = por %p1300_p12, %p1299_p11 }
  0x3d   :  { %v1162_v14 = vld [vmem:[#allocation5 + $0x18] sm:$0xff]   ;;  %v1166_v18 = vld [vmem:[#allocation5 + $0x20] sm:$0xff]   ;;  %v1169_v21 = vld [vmem:[#allocation5 + $0xe8] sm:$0xff]  }
  0x3e   :  { %1022 = vmatpush3.bf16.msra.mxu0 %v1154_v6  ;;  %v1163_v15 = vld [vmem:[#allocation5 + $0x98] sm:$0xff]   ;;  %v1167_v19 = vld [vmem:[#allocation5 + $0xa0] sm:$0xff]   ;;  %v1170_v22 = vld [vmem:[#allocation5 + $0x28] sm:$0xff]   ;;  %p1302_p0 = pnand %p1301_p13, %p1295_p10 }
  0x3f   :  { %1044 = vmatpush3.bf16.msra.mxu1 %v1155_v7  ;;  %1023 = vmatprep.subr.bf16.mxu0 %v1156_v8  ;;  %v1171_v23 = vld [vmem:[#allocation5 + $0xa8] sm:$0xff]   ;;  %v1172_v24 = vld [vmem:[#allocation5 + $0x70] sm:$0xff]   ;;  %v1176_v28 = vld [vmem:[#allocation5 + $0x78] sm:$0xff]  }
  0x40   :  { %1045 = vmatprep.subr.bf16.mxu1 %v1157_v9  ;;  %v1173_v25 = vld [vmem:[#allocation5 + $0xf0] sm:$0xff]   ;;  %v1177_v29 = vld [vmem:[#allocation5 + $0xf8] sm:$0xff]   ;;  %v63_v32 = vld [vmem:[#allocation2] sm:$0xff] }
  0x41   :  { %v1174_v26 = vld [vmem:[#allocation5 + $0x30] sm:$0xff]   ;;  %v1178_v30 = vld [vmem:[#allocation5 + $0x38] sm:$0xff]   ;;  %v67_v33 = vld [vmem:[#allocation2 + $0x20] sm:$0xff] }
  0x42   :  { %1024 = vmatpush3.bf16.msra.mxu0 %v1158_v10  ;;  %v1175_v27 = vld [vmem:[#allocation5 + $0xb0] sm:$0xff]   ;;  %v1179_v31 = vld [vmem:[#allocation5 + $0xb8] sm:$0xff]   ;;  %v64_v34 = vld [vmem:[#allocation2 + $0x8] sm:$0xff]  ;;  %v938_v35 = vcombine.low %v63_v32, %v67_v33  ;;  %v939_v36 = vcombine.high %v63_v32, %v67_v33 }
  0x43   :  { %1046 = vmatpush3.bf16.msra.mxu1 %v1159_v11  ;;  %1025 = vmatprep.subr.bf16.mxu0 %v1160_v12  ;;  %v68_v37 = vld [vmem:[#allocation2 + $0x28] sm:$0xff]  ;;  %v1180_v40 = vld [vmem:[#allocation5 + $0x140] sm:$0xff]   ;;  %v1188_v48 = vld [vmem:[#allocation5 + $0x150] sm:$0xff]  }
  0x44   :  { %1047 = vmatprep.subr.bf16.mxu1 %v1161_v13  ;;  %v940_v38 = vcombine.low %v64_v34, %v68_v37  ;;  %v941_v39 = vcombine.high %v64_v34, %v68_v37  ;;  %662 = vmatprep.mubr.bf16.mxu0 %v939_v36  ;;  %v1181_v41 = vld [vmem:[#allocation5 + $0x1c0] sm:$0xff]   ;;  %v1184_v44 = vld [vmem:[#allocation5 + $0x148] sm:$0xff]   ;;  %v1189_v49 = vld [vmem:[#allocation5 + $0x1d0] sm:$0xff]  }
  0x45   :  { %v1182_v42 = vld [vmem:[#allocation5 + $0x100] sm:$0xff]   ;;  %v1185_v45 = vld [vmem:[#allocation5 + $0x1c8] sm:$0xff]   ;;  %v1190_v50 = vld [vmem:[#allocation5 + $0x110] sm:$0xff]  }
  0x46   :  { %1026 = vmatpush3.bf16.msra.mxu0 %v1162_v14  ;;  %703 = vmatprep.mubr.bf16.mxu1 %v941_v39  ;;  %v1183_v43 = vld [vmem:[#allocation5 + $0x180] sm:$0xff]   ;;  %v1186_v46 = vld [vmem:[#allocation5 + $0x108] sm:$0xff]   ;;  %v1191_v51 = vld [vmem:[#allocation5 + $0x190] sm:$0xff]  }
  0x47   :  { %1048 = vmatpush3.bf16.msra.mxu1 %v1163_v15  ;;  %1027 = vmatprep.subr.bf16.mxu0 %v1164_v16  ;;  %v1187_v47 = vld [vmem:[#allocation5 + $0x188] sm:$0xff]   ;;  %v1192_v52 = vld [vmem:[#allocation5 + $0x158] sm:$0xff]   ;;  %v1196_v56 = vld [vmem:[#allocation5 + $0x160] sm:$0xff]  }
  0x48   :  { %1049 = vmatprep.subr.bf16.mxu1 %v1165_v17  ;;  %v1193_v53 = vld [vmem:[#allocation5 + $0x1d8] sm:$0xff]   ;;  %v1197_v57 = vld [vmem:[#allocation5 + $0x1e0] sm:$0xff]   ;;  %v1200_v60 = vld [vmem:[#allocation5 + $0x168] sm:$0xff]   ;;  %v1329_v17 = vmov 0.0  }
  0x49   :  { %v1194_v54 = vld [vmem:[#allocation5 + $0x118] sm:$0xff]   ;;  %v1198_v58 = vld [vmem:[#allocation5 + $0x120] sm:$0xff]   ;;  %v1201_v61 = vld [vmem:[#allocation5 + $0x1e8] sm:$0xff]  }
  0x4a   :  { %1028 = vmatpush3.bf16.msra.mxu0 %v1166_v18  ;;  %v1195_v55 = vld [vmem:[#allocation5 + $0x198] sm:$0xff]   ;;  %v1199_v59 = vld [vmem:[#allocation5 + $0x1a0] sm:$0xff]   ;;  %v1202_v62 = vld [vmem:[#allocation5 + $0x128] sm:$0xff]  }
  0x4b   :  { %1050 = vmatpush3.bf16.msra.mxu1 %v1167_v19  ;;  %1029 = vmatprep.subr.bf16.mxu0 %v1168_v20  ;;  %v1203_v63 = vld [vmem:[#allocation5 + $0x1a8] sm:$0xff]   ;;  %v1204_v0 = vld [vmem:[#allocation5 + $0x170] sm:$0xff]   ;;  %v1208_v4 = vld [vmem:[#allocation5 + $0x178] sm:$0xff]  }
  0x4c   :  { %1051 = vmatprep.subr.bf16.mxu1 %v1169_v21  ;;  %v1205_v1 = vld [vmem:[#allocation5 + $0x1f0] sm:$0xff]   ;;  %v1209_v5 = vld [vmem:[#allocation5 + $0x1f8] sm:$0xff]   ;;  %v1212_v16 = vld [vmem:[#allocation7] sm:$0xff]  }
  0x4d   :  { %v1206_v2 = vld [vmem:[#allocation5 + $0x130] sm:$0xff]   ;;  %v1210_v6 = vld [vmem:[#allocation5 + $0x138] sm:$0xff]   ;;  %v1213_v18 = vld [vmem:[#allocation7 + $0x8] sm:$0xff]  }
  0x4e   :  { %1030 = vmatpush3.bf16.msra.mxu0 %v1170_v22  ;;  %v1207_v3 = vld [vmem:[#allocation5 + $0x1b0] sm:$0xff]   ;;  %v1211_v7 = vld [vmem:[#allocation5 + $0x1b8] sm:$0xff]   ;;  %v1216_v21 = vld [vmem:[#allocation7 + $0x20] sm:$0xff]  }
  0x4f   :  { %1052 = vmatpush3.bf16.msra.mxu1 %v1171_v23  ;;  %1031 = vmatprep.subr.bf16.mxu0 %v1172_v24  ;;  %v65_v8 = vld [vmem:[#allocation2 + $0x10] sm:$0xff]  ;;  %v66_v12 = vld [vmem:[#allocation2 + $0x18] sm:$0xff]  ;;  %v1217_v22 = vld [vmem:[#allocation7 + $0x28] sm:$0xff]  }
  0x50   :  { %1053 = vmatprep.subr.bf16.mxu1 %v1173_v25  ;;  %v69_v9 = vld [vmem:[#allocation2 + $0x30] sm:$0xff]  ;;  %v70_v13 = vld [vmem:[#allocation2 + $0x38] sm:$0xff] }
  0x51   :  { %v942_v10 = vcombine.low %v65_v8, %v69_v9  ;;  %v943_v11 = vcombine.high %v65_v8, %v69_v9  ;;  %v944_v14 = vcombine.low %v66_v12, %v70_v13  ;;  %v945_v15 = vcombine.high %v66_v12, %v70_v13  ;;  %v1214_v19 = vld [vmem:[#allocation7 + $0x10] sm:$0xff]   ;;  %v1215_v20 = vld [vmem:[#allocation7 + $0x18] sm:$0xff]  }
  0x52   :  { %1032 = vmatpush3.bf16.msra.mxu0 %v1174_v26  ;;  %v1218_v23 = vld [vmem:[#allocation7 + $0x30] sm:$0xff]   ;;  %v1219_v24 = vld [vmem:[#allocation7 + $0x38] sm:$0xff]  }
  0x53   :  { %1054 = vmatpush3.bf16.msra.mxu1 %v1175_v27  ;;  %1033 = vmatprep.subr.bf16.mxu0 %v1176_v28  ;;  %v937_v27 = vld [vmem:[%s1426_s2] ss:$0 sm:$0xff] }
  0x54   :  { %1055 = vmatprep.subr.bf16.mxu1 %v1177_v29 }
  0x56   :  { %1034 = vmatpush3.bf16.msra.mxu0 %v1178_v30 }
  0x57   :  { %1056 = vmatpush3.bf16.msra.mxu1 %v1179_v31  ;;  %1063 = vmatprep.subr.bf16.mxu0 %v1180_v40 }
  0x58   :  { %1085 = vmatprep.subr.bf16.mxu1 %v1181_v41 }
  0x59   :  { %663 = vmatmul.mubr.bf16.vlgmr.msra.gmra.mrb[0].mxu0 %v938_v35 }
  0x5a   :  { %704 = vmatmul.mubr.bf16.vlgmr.msra.gmra.mrb[0].mxu1 %v940_v38  ;;  %1064 = vmatpush3.bf16.msra.mxu0 %v1182_v42 }
  0x5b   :  { %1086 = vmatpush3.bf16.msra.mxu1 %v1183_v43  ;;  %1065 = vmatprep.subr.bf16.mxu0 %v1184_v44 }
  0x5c   :  { %1087 = vmatprep.subr.bf16.mxu1 %v1185_v45  ;;  %744 = vmatprep.mubr.bf16.mxu0 %v943_v11 }
  0x5d   :  { %785 = vmatprep.mubr.bf16.mxu1 %v945_v15 }
  0x5e   :  { %1066 = vmatpush3.bf16.msra.mxu0 %v1186_v46 }
  0x5f   :  { %1088 = vmatpush3.bf16.msra.mxu1 %v1187_v47  ;;  %1067 = vmatprep.subr.bf16.mxu0 %v1188_v48 }
  0x60   :  { %1089 = vmatprep.subr.bf16.mxu1 %v1189_v49 }
  0x62   :  { %1068 = vmatpush3.bf16.msra.mxu0 %v1190_v50 }
  0x63   :  { %1090 = vmatpush3.bf16.msra.mxu1 %v1191_v51  ;;  %1069 = vmatprep.subr.bf16.mxu0 %v1192_v52 }
  0x64   :  { %1091 = vmatprep.subr.bf16.mxu1 %v1193_v53 }
  0x66   :  { %1070 = vmatpush3.bf16.msra.mxu0 %v1194_v54 }
  0x67   :  { %1092 = vmatpush3.bf16.msra.mxu1 %v1195_v55  ;;  %1071 = vmatprep.subr.bf16.mxu0 %v1196_v56 }
  0x68   :  { %1093 = vmatprep.subr.bf16.mxu1 %v1197_v57 }
  0x6a   :  { %1072 = vmatpush3.bf16.msra.mxu0 %v1198_v58 }
  0x6b   :  { %1094 = vmatpush3.bf16.msra.mxu1 %v1199_v59  ;;  %1073 = vmatprep.subr.bf16.mxu0 %v1200_v60 }
  0x6c   :  { %1095 = vmatprep.subr.bf16.mxu1 %v1201_v61 }
  0x6e   :  { %1074 = vmatpush3.bf16.msra.mxu0 %v1202_v62 }
  0x6f   :  { %1096 = vmatpush3.bf16.msra.mxu1 %v1203_v63  ;;  %1075 = vmatprep.subr.bf16.mxu0 %v1204_v0 }
  0x70   :  { %1097 = vmatprep.subr.bf16.mxu1 %v1205_v1 }
  0x72   :  { %1076 = vmatpush3.bf16.msra.mxu0 %v1206_v2 }
  0x73   :  { %1098 = vmatpush3.bf16.msra.mxu1 %v1207_v3  ;;  %1077 = vmatprep.subr.bf16.mxu0 %v1208_v4 }
  0x74   :  { %1099 = vmatprep.subr.bf16.mxu1 %v1209_v5  ;;  %v1010_v5 = vld [vmem:[%s1428_s4] ss:$0 sm:$0xff] }
  0x76   :  { %1078 = vmatpush3.bf16.msra.mxu0 %v1210_v6 }
  0x77   :  { %1100 = vmatpush3.bf16.msra.mxu1 %v1211_v7  ;;  %1116 = vmatprep.subr.bf16.mxu0 %v1329_v17 }
  0x79   :  { %745 = vmatmul.mubr.bf16.vlgmr.msra.gmra.mrb[4].mxu0 %v942_v10 }
  0x7a   :  { %786 = vmatmul.mubr.bf16.vlgmr.msra.gmra.mrb[4].mxu1 %v944_v14  ;;  %1117 = vmatpush3.bf16.msra.mxu0 %v1212_v16 }
  0x7b   :  { %1118 = vmatprep.subr.bf16.mxu0 %v1329_v17  ;;  %1132 = vmatprep.mubr.msk.bf16.mxu0 %vm1330_vm0, %v1329_v17 }
  0x7e   :  { %1119 = vmatpush3.bf16.msra.mxu0 %v1213_v18 }
  0x7f   :  { %1120 = vmatprep.subr.bf16.mxu0 %v1329_v17 }
  0x82   :  { %1121 = vmatpush3.bf16.msra.mxu0 %v1214_v19 }
  0x83   :  { %1122 = vmatprep.subr.bf16.mxu0 %v1329_v17 }
  0x86   :  { %1123 = vmatpush3.bf16.msra.mxu0 %v1215_v20 }
  0x87   :  { %1124 = vmatprep.subr.bf16.mxu0 %v1329_v17 }
  0x8a   :  { %1125 = vmatpush3.bf16.msra.mxu0 %v1216_v21 }
  0x8b   :  { %1126 = vmatprep.subr.bf16.mxu0 %v1329_v17 }
  0x8e   :  { %1127 = vmatpush3.bf16.msra.mxu0 %v1217_v22 }
  0x8f   :  { %1128 = vmatprep.subr.bf16.mxu0 %v1329_v17 }
  0x92   :  { %1129 = vmatpush3.bf16.msra.mxu0 %v1218_v23 }
  0x93   :  { %1130 = vmatprep.subr.bf16.mxu0 %v1329_v17 }
  0x96   :  { %1131 = vmatpush3.bf16.msra.mxu0 %v1219_v24 }
 0x12c   :  { %v1035_v25 = vpop.f32.mrb[0].mxu0 }
 0x12d   :  { %v1057_v26 = vpop.f32.mrb[0].mxu1  ;;  %v1036_v28 = vpop.f32.mrb[1].mxu0 }
 0x12e   :  { %v1037_v29 = vadd.f32 %v1036_v28, %v1035_v25  ;;  %v1058_v30 = vpop.f32.mrb[1].mxu1  ;;  %v1038_v31 = vpop.f32.mrb[2].mxu0 }
 0x12f   :  { %v1059_v32 = vadd.f32 %v1058_v30, %v1057_v26  ;;  %v1060_v33 = vpop.f32.mrb[2].mxu1  ;;  %v1039_v34 = vpop.f32.mrb[3].mxu0 }
 0x130   :  { %v665_v35 = vadd.f32 %v1037_v29, %v937_v27  ;;  %v1040_v36 = vadd.f32 %v1039_v34, %v1038_v31  ;;  %v1061_v37 = vpop.f32.mrb[3].mxu1 }
 0x131   :  { %v1062_v38 = vadd.f32 %v1061_v37, %v1060_v33 }
 0x132   :  { %v706_v39 = vadd.f32 %v1059_v32, %v665_v35  ;;  %v668_v40 = vadd.f32 %v1040_v36, %v937_v27 }
 0x134   :  { %v709_v41 = vadd.f32 %v1062_v38, %v668_v40 }
 0x14c   :  { %v1079_v42 = vpop.f32.mrb[4].mxu0 }
 0x14d   :  { %v1101_v43 = vpop.f32.mrb[4].mxu1  ;;  %v1080_v44 = vpop.f32.mrb[5].mxu0 }
 0x14e   :  { %v1081_v45 = vadd.f32 %v1080_v44, %v1079_v42  ;;  %v1102_v46 = vpop.f32.mrb[5].mxu1  ;;  %v1082_v47 = vpop.f32.mrb[6].mxu0 }
 0x14f   :  { %v1103_v48 = vadd.f32 %v1102_v46, %v1101_v43  ;;  %v1104_v49 = vpop.f32.mrb[6].mxu1  ;;  %v1083_v50 = vpop.f32.mrb[7].mxu0 }
 0x150   :  { %v747_v51 = vadd.f32 %v1081_v45, %v706_v39  ;;  %v1084_v52 = vadd.f32 %v1083_v50, %v1082_v47  ;;  %v1105_v53 = vpop.f32.mrb[7].mxu1 }
 0x151   :  { %v1106_v54 = vadd.f32 %v1105_v53, %v1104_v49 }
 0x152   :  { %v788_v55 = vadd.f32 %v1103_v48, %v747_v51  ;;  %v750_v56 = vadd.f32 %v1084_v52, %v709_v41 }
 0x154   :  { %v794_v57 = vsub.f32 0.0, %v788_v55  ;;  %v791_v58 = vadd.f32 %v1106_v54, %v750_v56 }
 0x156   :  { %v796_v59 = vmul.f32 1.442695, %v794_v57  ;;  %v795_v60 = vsub.f32 0.0, %v791_v58 }
 0x158   :  { %1220 = vpow2.f32 %v796_v59  ;;  %v798_v61 = vmul.f32 1.442695, %v795_v60 }
 0x15a   :  { %1222 = vpow2.f32 %v798_v61 }
 0x162   :  { %v1221_v62 = vpop.eup %1220 }
 0x163   :  { %v800_v63 = vadd.f32 1.0, %v1221_v62 }
 0x164   :  { %v1223_v0 = vpop.eup %1222 }
 0x165   :  { %v801_v1 = vadd.f32 1.0, %v1223_v0  ;;  %1224 = vrcp.f32 %v800_v63 }
 0x167   :  { %1226 = vrcp.f32 %v801_v1 }
 0x16f   :  { %v1225_v2 = vpop.eup %1224 }
 0x171   :  { %v1227_v3 = vpop.eup %1226 }
 0x172   :  { %v804_v4 = vpack.c.bf16 %v1227_v3, %v1225_v2 }
 0x174   :  { %1133 = vmatmul.mubr.bf16.vlgmr.msra.gmra.mrb[8].mxu0 %v804_v4 }
 0x247   :  { %v910_v6 = vpop.f32.mrb[8].mxu0 }
 0x248   :  { %v911_v7 = vadd.f32 %v1010_v5, %v910_v6  ;;  %v1134_v8 = vpop.f32.mrb[9].mxu0 }
 0x249   :  { %v913_v9 = vpop.f32.mrb[10].mxu0 }
 0x24a   :  { %917 = vst [vmem:[#allocation8] sm:$0xff] %v911_v7  ;;  %v914_v10 = vadd.f32 %v1010_v5, %v913_v9  ;;  %v1135_v11 = vpop.f32.mrb[11].mxu0 }
 0x24c   :  { %918 = vst [vmem:[#allocation8 + $0x8] sm:$0xff] %v914_v10 }
 0x24d   :  { %1305 = shalt.err (!%p1302_p0)
}
 0x24e   :  { %s1306_s12 = scalar_lea.hbm %s1429_s5, 256 }
 0x24f   :  { %p1307_p1 = scmp.ne.s32.totalorder %s1429_s5, %s1306_s12  ;;  %p1310_p2 = scmp.lt.u32.totalorder %s1306_s12, %s1429_s5 }
 0x251   :  { %p1312_p3 = pnand %p1310_p2, %p1307_p1 }
 0x253   :  { %1315 = shalt.err (!%p1312_p3)
}
 0x254   :  { %s1332_s1 = smov 128   ;;  %s1333_s17 = smov 8  }
 0x255   :  { %930 = dma.vmem_to_hbm [thread:$0]  %s925_s9, 256, %s1429_s5, [#allocation4], %s1332_s1, %s1332_s1, %s1333_s17  }
 0x256   :  { %1320 = dma.done.wait [#allocation4], 256  }
 0x257   :  { %1321 = vsyncadd [#allocation4], 4294967040 }
 0x258   :  { %934 = vsyncpa [#allocation3], 1 }
 0x259   :  { %935 = vsyncpa [#allocation6], 1 }
 0x25a   :  { %936 = vsyncpa [#allocation4], 1 }

// kernel: tpu_custom_call.1
= control target key start
LH: loop header
LB: loop body
LE: loop exit
PB: predicated region body
PF: predicated region fallthrough
CT: control target
= control target key end

     0   :  { %10 = vsyncpa [#allocation3], 0  ;;  %s1424_s0 = inlined_call_operand.hbm [shape: bf16[16,1024], index: 0, kind: input, shape index: {}]   ;;  %s1425_s1 = inlined_call_operand.hbm [shape: bf16[1024,128], index: 1, kind: input, shape index: {}]   ;;  %s1426_s2 = inlined_call_operand.vmem [shape: f32[1,128], index: 2, kind: input, shape index: {}]   ;;  %s1427_s3 = inlined_call_operand.hbm [shape: bf16[128,128], index: 3, kind: input, shape index: {}]   ;;  %s1428_s4 = inlined_call_operand.vmem [shape: f32[1,128], index: 4, kind: input, shape index: {}]   ;;  %s1429_s5 = inlined_call_operand.hbm [shape: f32[16,128], index: 5, kind: output, shape index: {}]  }
   0x1   :  { %11 = vsyncpa [#allocation6], 0 }
   0x2   :  { %12 = vsyncpa [#allocation4], 0  ;;  %s1322_s18 = smov [#allocation5]   ;;  %s1228_s22 = scalar_lea.hbm %s1425_s1, 8192 }
   0x3   :  { %s30_s19 = sshll.u32 %s1322_s18, 4  ;;  %p1229_p0 = scmp.ne.s32.totalorder %s1425_s1, %s1228_s22  ;;  %s31_s19 = int_to_ptr.vmem [resolvable:$true] %s30_s19 }
   0x4   :  { %p1232_p1 = scmp.lt.u32.totalorder %s1228_s22, %s1425_s1 }
   0x6   :  { %p1234_p2 = pnand %p1232_p1, %p1229_p0 }
   0x8   :  { %1237 = shalt.err (!%p1234_p2)
}
   0x9   :  { %s1238_s27 = scalar_lea.vmem %s31_s19, 8192  ;;  %p1243_p4 = scmp.lt.s32.totalorder %s31_s19, %s31_s19 }
   0xa   :  { %p1239_p3 = scmp.ne.s32.totalorder %s31_s19, %s1238_s27  ;;  %p1244_p5 = scmp.lt.s32.totalorder %s1238_s27, %s1238_s27 }
   0xc   :  { %p1245_p6 = por %p1244_p5, %p1243_p4 }
   0xe   :  { %p1246_p7 = pnand %p1245_p6, %p1239_p3 }
  0x10   :  { %1249 = shalt.err (!%p1246_p7)
}
  0x11   :  { %s1323_s28 = smov 64   ;;  %s1324_s29 = smov 4  }
  0x12   :  { %36 = dma.hbm_to_vmem [thread:$0]  %s1425_s1, 8192, %s31_s19, [#allocation6], %s1323_s28, %s1323_s28, %s1324_s29  }
  0x13   :  { %s1325_s7 = smov [#allocation2]   ;;  %s1250_s11 = scalar_lea.hbm %s1424_s0, 1024 }
  0x14   :  { %s18_s8 = sshll.u32 %s1325_s7, 4  ;;  %p1251_p8 = scmp.ne.s32.totalorder %s1424_s0, %s1250_s11  ;;  %s19_s8 = int_to_ptr.vmem [resolvable:$true] %s18_s8 }
  0x15   :  { %p1254_p9 = scmp.lt.u32.totalorder %s1250_s11, %s1424_s0 }
  0x17   :  { %p1256_p10 = pnand %p1254_p9, %p1251_p8 }
  0x19   :  { %1259 = shalt.err (!%p1256_p10)
}
  0x1a   :  { %s1260_s16 = scalar_lea.vmem %s19_s8, 1024  ;;  %p1265_p12 = scmp.lt.s32.totalorder %s19_s8, %s19_s8 }
  0x1b   :  { %p1261_p11 = scmp.ne.s32.totalorder %s19_s8, %s1260_s16  ;;  %p1266_p13 = scmp.lt.s32.totalorder %s1260_s16, %s1260_s16 }
  0x1d   :  { %p1267_p0 = por %p1266_p13, %p1265_p12 }
  0x1f   :  { %p1268_p1 = pnand %p1267_p0, %p1261_p11 }
  0x21   :  { %1271 = shalt.err (!%p1268_p1)
}
  0x22   :  { %s1326_s1 = smov 512   ;;  %s1327_s17 = smov 32  }
  0x23   :  { %24 = dma.hbm_to_vmem [thread:$0]  %s1424_s0, 1024, %s19_s8, [#allocation3], %s1326_s1, %s1326_s1, %s1327_s17  }
  0x24   :  { %s1328_s20 = smov [#allocation7]   ;;  %s1272_s24 = scalar_lea.hbm %s1427_s3, 1024 }
  0x25   :  { %s44_s21 = sshll.u32 %s1328_s20, 4  ;;  %p1273_p2 = scmp.ne.s32.totalorder %s1427_s3, %s1272_s24  ;;  %s45_s21 = int_to_ptr.vmem [resolvable:$true] %s44_s21 }
  0x26   :  { %p1276_p3 = scmp.lt.u32.totalorder %s1272_s24, %s1427_s3 }
  0x28   :  { %p1278_p4 = pnand %p1276_p3, %p1273_p2 }
  0x2a   :  { %1281 = shalt.err (!%p1278_p4)
}
  0x2b   :  { %s1282_s6 = scalar_lea.vmem %s45_s21, 1024  ;;  %p1287_p6 = scmp.lt.s32.totalorder %s45_s21, %s45_s21 }
  0x2c   :  { %p1283_p5 = scmp.ne.s32.totalorder %s45_s21, %s1282_s6  ;;  %p1288_p7 = scmp.lt.s32.totalorder %s1282_s6, %s1282_s6 }
  0x2e   :  { %p1289_p8 = por %p1288_p7, %p1287_p6 }
  0x30   :  { %p1290_p9 = pnand %p1289_p8, %p1283_p5 }
  0x32   :  { %1293 = shalt.err (!%p1290_p9)
}
  0x33   :  { %50 = dma.hbm_to_vmem [thread:$0]  %s1427_s3, 1024, %s45_s21, [#allocation6], %s1323_s28, %s1323_s28, %s1324_s29  }
  0x34   :  { %1316 = dma.done.wait [#allocation3], 1024  }
  0x35   :  { %1317 = vsyncadd [#allocation3], 4294966272 }
  0x36   :  { %1318 = dma.done.wait [#allocation6], 9216  }
  0x37   :  { %1319 = vsyncadd [#allocation6], 4294958080  ;;  %v1148_v0 = vld [vmem:[#allocation5 + $0x40] sm:$0xff]   ;;  %v1152_v4 = vld [vmem:[#allocation5 + $0x48] sm:$0xff]   ;;  %vm1330_vm0 = vmmov 0   ;;  %s1331_s8 = smov [#allocation8]  }
  0x38   :  { %v1149_v1 = vld [vmem:[#allocation5 + $0xc0] sm:$0xff]   ;;  %1019 = vmatprep.subr.bf16.mxu0 %v1148_v0  ;;  %v1153_v5 = vld [vmem:[#allocation5 + $0xc8] sm:$0xff]   ;;  %v1156_v8 = vld [vmem:[#allocation5 + $0x50] sm:$0xff]   ;;  %s924_s9 = sshll.u32 %s1331_s8, 4  ;;  %s925_s9 = int_to_ptr.vmem [resolvable:$true] %s924_s9 }
  0x39   :  { %v1150_v2 = vld [vmem:[#allocation5] sm:$0xff]   ;;  %1041 = vmatprep.subr.bf16.mxu1 %v1149_v1  ;;  %v1154_v6 = vld [vmem:[#allocation5 + $0x8] sm:$0xff]   ;;  %v1157_v9 = vld [vmem:[#allocation5 + $0xd0] sm:$0xff]   ;;  %s1294_s10 = scalar_lea.vmem %s925_s9, 256  ;;  %p1299_p11 = scmp.lt.s32.totalorder %s925_s9, %s925_s9 }
  0x3a   :  { %v1151_v3 = vld [vmem:[#allocation5 + $0x80] sm:$0xff]   ;;  %1020 = vmatpush3.bf16.msra.mxu0 %v1150_v2  ;;  %v1155_v7 = vld [vmem:[#allocation5 + $0x88] sm:$0xff]   ;;  %v1158_v10 = vld [vmem:[#allocation5 + $0x10] sm:$0xff]   ;;  %p1295_p10 = scmp.ne.s32.totalorder %s925_s9, %s1294_s10  ;;  %p1300_p12 = scmp.lt.s32.totalorder %s1294_s10, %s1294_s10 }
  0x3b   :  { %1042 = vmatpush3.bf16.msra.mxu1 %v1151_v3  ;;  %1021 = vmatprep.subr.bf16.mxu0 %v1152_v4  ;;  %v1159_v11 = vld [vmem:[#allocation5 + $0x90] sm:$0xff]   ;;  %v1160_v12 = vld [vmem:[#allocation5 + $0x58] sm:$0xff]   ;;  %v1164_v16 = vld [vmem:[#allocation5 + $0x60] sm:$0xff]  }
  0x3c   :  { %1043 = vmatprep.subr.bf16.mxu1 %v1153_v5  ;;  %v1161_v13 = vld [vmem:[#allocation5 + $0xd8] sm:$0xff]   ;;  %v1165_v17 = vld [vmem:[#allocation5 + $0xe0] sm:$0xff]   ;;  %v1168_v20 = vld [vmem:[#allocation5 + $0x68] sm:$0xff]   ;;  %p1301_p13 = por %p1300_p12, %p1299_p11 }
  0x3d   :  { %v1162_v14 = vld [vmem:[#allocation5 + $0x18] sm:$0xff]   ;;  %v1166_v18 = vld [vmem:[#allocation5 + $0x20] sm:$0xff]   ;;  %v1169_v21 = vld [vmem:[#allocation5 + $0xe8] sm:$0xff]  }
  0x3e   :  { %1022 = vmatpush3.bf16.msra.mxu0 %v1154_v6  ;;  %v1163_v15 = vld [vmem:[#allocation5 + $0x98] sm:$0xff]   ;;  %v1167_v19 = vld [vmem:[#allocation5 + $0xa0] sm:$0xff]   ;;  %v1170_v22 = vld [vmem:[#allocation5 + $0x28] sm:$0xff]   ;;  %p1302_p0 = pnand %p1301_p13, %p1295_p10 }
  0x3f   :  { %1044 = vmatpush3.bf16.msra.mxu1 %v1155_v7  ;;  %1023 = vmatprep.subr.bf16.mxu0 %v1156_v8  ;;  %v1171_v23 = vld [vmem:[#allocation5 + $0xa8] sm:$0xff]   ;;  %v1172_v24 = vld [vmem:[#allocation5 + $0x70] sm:$0xff]   ;;  %v1176_v28 = vld [vmem:[#allocation5 + $0x78] sm:$0xff]  }
  0x40   :  { %1045 = vmatprep.subr.bf16.mxu1 %v1157_v9  ;;  %v1173_v25 = vld [vmem:[#allocation5 + $0xf0] sm:$0xff]   ;;  %v1177_v29 = vld [vmem:[#allocation5 + $0xf8] sm:$0xff]   ;;  %v63_v32 = vld [vmem:[#allocation2] sm:$0xff] }
  0x41   :  { %v1174_v26 = vld [vmem:[#allocation5 + $0x30] sm:$0xff]   ;;  %v1178_v30 = vld [vmem:[#allocation5 + $0x38] sm:$0xff]   ;;  %v67_v33 = vld [vmem:[#allocation2 + $0x20] sm:$0xff] }
  0x42   :  { %1024 = vmatpush3.bf16.msra.mxu0 %v1158_v10  ;;  %v1175_v27 = vld [vmem:[#allocation5 + $0xb0] sm:$0xff]   ;;  %v1179_v31 = vld [vmem:[#allocation5 + $0xb8] sm:$0xff]   ;;  %v64_v34 = vld [vmem:[#allocation2 + $0x8] sm:$0xff]  ;;  %v938_v35 = vcombine.low %v63_v32, %v67_v33  ;;  %v939_v36 = vcombine.high %v63_v32, %v67_v33 }
  0x43   :  { %1046 = vmatpush3.bf16.msra.mxu1 %v1159_v11  ;;  %1025 = vmatprep.subr.bf16.mxu0 %v1160_v12  ;;  %v68_v37 = vld [vmem:[#allocation2 + $0x28] sm:$0xff]  ;;  %v1180_v40 = vld [vmem:[#allocation5 + $0x140] sm:$0xff]   ;;  %v1188_v48 = vld [vmem:[#allocation5 + $0x150] sm:$0xff]  }
  0x44   :  { %1047 = vmatprep.subr.bf16.mxu1 %v1161_v13  ;;  %v940_v38 = vcombine.low %v64_v34, %v68_v37  ;;  %v941_v39 = vcombine.high %v64_v34, %v68_v37  ;;  %662 = vmatprep.mubr.bf16.mxu0 %v939_v36  ;;  %v1181_v41 = vld [vmem:[#allocation5 + $0x1c0] sm:$0xff]   ;;  %v1184_v44 = vld [vmem:[#allocation5 + $0x148] sm:$0xff]   ;;  %v1189_v49 = vld [vmem:[#allocation5 + $0x1d0] sm:$0xff]  }
  0x45   :  { %v1182_v42 = vld [vmem:[#allocation5 + $0x100] sm:$0xff]   ;;  %v1185_v45 = vld [vmem:[#allocation5 + $0x1c8] sm:$0xff]   ;;  %v1190_v50 = vld [vmem:[#allocation5 + $0x110] sm:$0xff]  }
  0x46   :  { %1026 = vmatpush3.bf16.msra.mxu0 %v1162_v14  ;;  %703 = vmatprep.mubr.bf16.mxu1 %v941_v39  ;;  %v1183_v43 = vld [vmem:[#allocation5 + $0x180] sm:$0xff]   ;;  %v1186_v46 = vld [vmem:[#allocation5 + $0x108] sm:$0xff]   ;;  %v1191_v51 = vld [vmem:[#allocation5 + $0x190] sm:$0xff]  }
  0x47   :  { %1048 = vmatpush3.bf16.msra.mxu1 %v1163_v15  ;;  %1027 = vmatprep.subr.bf16.mxu0 %v1164_v16  ;;  %v1187_v47 = vld [vmem:[#allocation5 + $0x188] sm:$0xff]   ;;  %v1192_v52 = vld [vmem:[#allocation5 + $0x158] sm:$0xff]   ;;  %v1196_v56 = vld [vmem:[#allocation5 + $0x160] sm:$0xff]  }
  0x48   :  { %1049 = vmatprep.subr.bf16.mxu1 %v1165_v17  ;;  %v1193_v53 = vld [vmem:[#allocation5 + $0x1d8] sm:$0xff]   ;;  %v1197_v57 = vld [vmem:[#allocation5 + $0x1e0] sm:$0xff]   ;;  %v1200_v60 = vld [vmem:[#allocation5 + $0x168] sm:$0xff]   ;;  %v1329_v17 = vmov 0.0  }
  0x49   :  { %v1194_v54 = vld [vmem:[#allocation5 + $0x118] sm:$0xff]   ;;  %v1198_v58 = vld [vmem:[#allocation5 + $0x120] sm:$0xff]   ;;  %v1201_v61 = vld [vmem:[#allocation5 + $0x1e8] sm:$0xff]  }
  0x4a   :  { %1028 = vmatpush3.bf16.msra.mxu0 %v1166_v18  ;;  %v1195_v55 = vld [vmem:[#allocation5 + $0x198] sm:$0xff]   ;;  %v1199_v59 = vld [vmem:[#allocation5 + $0x1a0] sm:$0xff]   ;;  %v1202_v62 = vld [vmem:[#allocation5 + $0x128] sm:$0xff]  }
  0x4b   :  { %1050 = vmatpush3.bf16.msra.mxu1 %v1167_v19  ;;  %1029 = vmatprep.subr.bf16.mxu0 %v1168_v20  ;;  %v1203_v63 = vld [vmem:[#allocation5 + $0x1a8] sm:$0xff]   ;;  %v1204_v0 = vld [vmem:[#allocation5 + $0x170] sm:$0xff]   ;;  %v1208_v4 = vld [vmem:[#allocation5 + $0x178] sm:$0xff]  }
  0x4c   :  { %1051 = vmatprep.subr.bf16.mxu1 %v1169_v21  ;;  %v1205_v1 = vld [vmem:[#allocation5 + $0x1f0] sm:$0xff]   ;;  %v1209_v5 = vld [vmem:[#allocation5 + $0x1f8] sm:$0xff]   ;;  %v1212_v16 = vld [vmem:[#allocation7] sm:$0xff]  }
  0x4d   :  { %v1206_v2 = vld [vmem:[#allocation5 + $0x130] sm:$0xff]   ;;  %v1210_v6 = vld [vmem:[#allocation5 + $0x138] sm:$0xff]   ;;  %v1213_v18 = vld [vmem:[#allocation7 + $0x8] sm:$0xff]  }
  0x4e   :  { %1030 = vmatpush3.bf16.msra.mxu0 %v1170_v22  ;;  %v1207_v3 = vld [vmem:[#allocation5 + $0x1b0] sm:$0xff]   ;;  %v1211_v7 = vld [vmem:[#allocation5 + $0x1b8] sm:$0xff]   ;;  %v1216_v21 = vld [vmem:[#allocation7 + $0x20] sm:$0xff]  }
  0x4f   :  { %1052 = vmatpush3.bf16.msra.mxu1 %v1171_v23  ;;  %1031 = vmatprep.subr.bf16.mxu0 %v1172_v24  ;;  %v65_v8 = vld [vmem:[#allocation2 + $0x10] sm:$0xff]  ;;  %v66_v12 = vld [vmem:[#allocation2 + $0x18] sm:$0xff]  ;;  %v1217_v22 = vld [vmem:[#allocation7 + $0x28] sm:$0xff]  }
  0x50   :  { %1053 = vmatprep.subr.bf16.mxu1 %v1173_v25  ;;  %v69_v9 = vld [vmem:[#allocation2 + $0x30] sm:$0xff]  ;;  %v70_v13 = vld [vmem:[#allocation2 + $0x38] sm:$0xff] }
  0x51   :  { %v942_v10 = vcombine.low %v65_v8, %v69_v9  ;;  %v943_v11 = vcombine.high %v65_v8, %v69_v9  ;;  %v944_v14 = vcombine.low %v66_v12, %v70_v13  ;;  %v945_v15 = vcombine.high %v66_v12, %v70_v13  ;;  %v1214_v19 = vld [vmem:[#allocation7 + $0x10] sm:$0xff]   ;;  %v1215_v20 = vld [vmem:[#allocation7 + $0x18] sm:$0xff]  }
  0x52   :  { %1032 = vmatpush3.bf16.msra.mxu0 %v1174_v26  ;;  %v1218_v23 = vld [vmem:[#allocation7 + $0x30] sm:$0xff]   ;;  %v1219_v24 = vld [vmem:[#allocation7 + $0x38] sm:$0xff]  }
  0x53   :  { %1054 = vmatpush3.bf16.msra.mxu1 %v1175_v27  ;;  %1033 = vmatprep.subr.bf16.mxu0 %v1176_v28  ;;  %v937_v27 = vld [vmem:[%s1426_s2] ss:$0 sm:$0xff] }
  0x54   :  { %1055 = vmatprep.subr.bf16.mxu1 %v1177_v29 }
  0x56   :  { %1034 = vmatpush3.bf16.msra.mxu0 %v1178_v30 }
  0x57   :  { %1056 = vmatpush3.bf16.msra.mxu1 %v1179_v31  ;;  %1063 = vmatprep.subr.bf16.mxu0 %v1180_v40 }
  0x58   :  { %1085 = vmatprep.subr.bf16.mxu1 %v1181_v41 }
  0x59   :  { %663 = vmatmul.mubr.bf16.vlgmr.msra.gmra.mrb[0].mxu0 %v938_v35 }
  0x5a   :  { %704 = vmatmul.mubr.bf16.vlgmr.msra.gmra.mrb[0].mxu1 %v940_v38  ;;  %1064 = vmatpush3.bf16.msra.mxu0 %v1182_v42 }
  0x5b   :  { %1086 = vmatpush3.bf16.msra.mxu1 %v1183_v43  ;;  %1065 = vmatprep.subr.bf16.mxu0 %v1184_v44 }
  0x5c   :  { %1087 = vmatprep.subr.bf16.mxu1 %v1185_v45  ;;  %744 = vmatprep.mubr.bf16.mxu0 %v943_v11 }
  0x5d   :  { %785 = vmatprep.mubr.bf16.mxu1 %v945_v15 }
  0x5e   :  { %1066 = vmatpush3.bf16.msra.mxu0 %v1186_v46 }
  0x5f   :  { %1088 = vmatpush3.bf16.msra.mxu1 %v1187_v47  ;;  %1067 = vmatprep.subr.bf16.mxu0 %v1188_v48 }
  0x60   :  { %1089 = vmatprep.subr.bf16.mxu1 %v1189_v49 }
  0x62   :  { %1068 = vmatpush3.bf16.msra.mxu0 %v1190_v50 }
  0x63   :  { %1090 = vmatpush3.bf16.msra.mxu1 %v1191_v51  ;;  %1069 = vmatprep.subr.bf16.mxu0 %v1192_v52 }
  0x64   :  { %1091 = vmatprep.subr.bf16.mxu1 %v1193_v53 }
  0x66   :  { %1070 = vmatpush3.bf16.msra.mxu0 %v1194_v54 }
  0x67   :  { %1092 = vmatpush3.bf16.msra.mxu1 %v1195_v55  ;;  %1071 = vmatprep.subr.bf16.mxu0 %v1196_v56 }
  0x68   :  { %1093 = vmatprep.subr.bf16.mxu1 %v1197_v57 }
  0x6a   :  { %1072 = vmatpush3.bf16.msra.mxu0 %v1198_v58 }
  0x6b   :  { %1094 = vmatpush3.bf16.msra.mxu1 %v1199_v59  ;;  %1073 = vmatprep.subr.bf16.mxu0 %v1200_v60 }
  0x6c   :  { %1095 = vmatprep.subr.bf16.mxu1 %v1201_v61 }
  0x6e   :  { %1074 = vmatpush3.bf16.msra.mxu0 %v1202_v62 }
  0x6f   :  { %1096 = vmatpush3.bf16.msra.mxu1 %v1203_v63  ;;  %1075 = vmatprep.subr.bf16.mxu0 %v1204_v0 }
  0x70   :  { %1097 = vmatprep.subr.bf16.mxu1 %v1205_v1 }
  0x72   :  { %1076 = vmatpush3.bf16.msra.mxu0 %v1206_v2 }
  0x73   :  { %1098 = vmatpush3.bf16.msra.mxu1 %v1207_v3  ;;  %1077 = vmatprep.subr.bf16.mxu0 %v1208_v4 }
  0x74   :  { %1099 = vmatprep.subr.bf16.mxu1 %v1209_v5  ;;  %v1010_v5 = vld [vmem:[%s1428_s4] ss:$0 sm:$0xff] }
  0x76   :  { %1078 = vmatpush3.bf16.msra.mxu0 %v1210_v6 }
  0x77   :  { %1100 = vmatpush3.bf16.msra.mxu1 %v1211_v7  ;;  %1116 = vmatprep.subr.bf16.mxu0 %v1329_v17 }
  0x79   :  { %745 = vmatmul.mubr.bf16.vlgmr.msra.gmra.mrb[4].mxu0 %v942_v10 }
  0x7a   :  { %786 = vmatmul.mubr.bf16.vlgmr.msra.gmra.mrb[4].mxu1 %v944_v14  ;;  %1117 = vmatpush3.bf16.msra.mxu0 %v1212_v16 }
  0x7b   :  { %1118 = vmatprep.subr.bf16.mxu0 %v1329_v17  ;;  %1132 = vmatprep.mubr.msk.bf16.mxu0 %vm1330_vm0, %v1329_v17 }
  0x7e   :  { %1119 = vmatpush3.bf16.msra.mxu0 %v1213_v18 }
  0x7f   :  { %1120 = vmatprep.subr.bf16.mxu0 %v1329_v17 }
  0x82   :  { %1121 = vmatpush3.bf16.msra.mxu0 %v1214_v19 }
  0x83   :  { %1122 = vmatprep.subr.bf16.mxu0 %v1329_v17 }
  0x86   :  { %1123 = vmatpush3.bf16.msra.mxu0 %v1215_v20 }
  0x87   :  { %1124 = vmatprep.subr.bf16.mxu0 %v1329_v17 }
  0x8a   :  { %1125 = vmatpush3.bf16.msra.mxu0 %v1216_v21 }
  0x8b   :  { %1126 = vmatprep.subr.bf16.mxu0 %v1329_v17 }
  0x8e   :  { %1127 = vmatpush3.bf16.msra.mxu0 %v1217_v22 }
  0x8f   :  { %1128 = vmatprep.subr.bf16.mxu0 %v1329_v17 }
  0x92   :  { %1129 = vmatpush3.bf16.msra.mxu0 %v1218_v23 }
  0x93   :  { %1130 = vmatprep.subr.bf16.mxu0 %v1329_v17 }
  0x96   :  { %1131 = vmatpush3.bf16.msra.mxu0 %v1219_v24 }
 0x12c   :  { %v1035_v25 = vpop.f32.mrb[0].mxu0 }
 0x12d   :  { %v1057_v26 = vpop.f32.mrb[0].mxu1  ;;  %v1036_v28 = vpop.f32.mrb[1].mxu0 }
 0x12e   :  { %v1037_v29 = vadd.f32 %v1036_v28, %v1035_v25  ;;  %v1058_v30 = vpop.f32.mrb[1].mxu1  ;;  %v1038_v31 = vpop.f32.mrb[2].mxu0 }
 0x12f   :  { %v1059_v32 = vadd.f32 %v1058_v30, %v1057_v26  ;;  %v1060_v33 = vpop.f32.mrb[2].mxu1  ;;  %v1039_v34 = vpop.f32.mrb[3].mxu0 }
 0x130   :  { %v665_v35 = vadd.f32 %v1037_v29, %v937_v27  ;;  %v1040_v36 = vadd.f32 %v1039_v34, %v1038_v31  ;;  %v1061_v37 = vpop.f32.mrb[3].mxu1 }
 0x131   :  { %v1062_v38 = vadd.f32 %v1061_v37, %v1060_v33 }
 0x132   :  { %v706_v39 = vadd.f32 %v1059_v32, %v665_v35  ;;  %v668_v40 = vadd.f32 %v1040_v36, %v937_v27 }
 0x134   :  { %v709_v41 = vadd.f32 %v1062_v38, %v668_v40 }
 0x14c   :  { %v1079_v42 = vpop.f32.mrb[4].mxu0 }
 0x14d   :  { %v1101_v43 = vpop.f32.mrb[4].mxu1  ;;  %v1080_v44 = vpop.f32.mrb[5].mxu0 }
 0x14e   :  { %v1081_v45 = vadd.f32 %v1080_v44, %v1079_v42  ;;  %v1102_v46 = vpop.f32.mrb[5].mxu1  ;;  %v1082_v47 = vpop.f32.mrb[6].mxu0 }
 0x14f   :  { %v1103_v48 = vadd.f32 %v1102_v46, %v1101_v43  ;;  %v1104_v49 = vpop.f32.mrb[6].mxu1  ;;  %v1083_v50 = vpop.f32.mrb[7].mxu0 }
 0x150   :  { %v747_v51 = vadd.f32 %v1081_v45, %v706_v39  ;;  %v1084_v52 = vadd.f32 %v1083_v50, %v1082_v47  ;;  %v1105_v53 = vpop.f32.mrb[7].mxu1 }
 0x151   :  { %v1106_v54 = vadd.f32 %v1105_v53, %v1104_v49 }
 0x152   :  { %v788_v55 = vadd.f32 %v1103_v48, %v747_v51  ;;  %v750_v56 = vadd.f32 %v1084_v52, %v709_v41 }
 0x154   :  { %v794_v57 = vsub.f32 0.0, %v788_v55  ;;  %v791_v58 = vadd.f32 %v1106_v54, %v750_v56 }
 0x156   :  { %v796_v59 = vmul.f32 1.442695, %v794_v57  ;;  %v795_v60 = vsub.f32 0.0, %v791_v58 }
 0x158   :  { %1220 = vpow2.f32 %v796_v59  ;;  %v798_v61 = vmul.f32 1.442695, %v795_v60 }
 0x15a   :  { %1222 = vpow2.f32 %v798_v61 }
 0x162   :  { %v1221_v62 = vpop.eup %1220 }
 0x163   :  { %v800_v63 = vadd.f32 1.0, %v1221_v62 }
 0x164   :  { %v1223_v0 = vpop.eup %1222 }
 0x165   :  { %v801_v1 = vadd.f32 1.0, %v1223_v0  ;;  %1224 = vrcp.f32 %v800_v63 }
 0x167   :  { %1226 = vrcp.f32 %v801_v1 }
 0x16f   :  { %v1225_v2 = vpop.eup %1224 }
 0x171   :  { %v1227_v3 = vpop.eup %1226 }
 0x172   :  { %v804_v4 = vpack.c.bf16 %v1227_v3, %v1225_v2 }
 0x174   :  { %1133 = vmatmul.mubr.bf16.vlgmr.msra.gmra.mrb[8].mxu0 %v804_v4 }
 0x247   :  { %v910_v6 = vpop.f32.mrb[8].mxu0 }
 0x248   :  { %v911_v7 = vadd.f32 %v1010_v5, %v910_v6  ;;  %v1134_v8 = vpop.f32.mrb[9].mxu0 }
 0x249   :  { %v913_v9 = vpop.f32.mrb[10].mxu0 }
 0x24a   :  { %917 = vst [vmem:[#allocation8] sm:$0xff] %v911_v7  ;;  %v914_v10 = vadd.f32 %v1010_v5, %v913_v9  ;;  %v1135_v11 = vpop.f32.mrb[11].mxu0 }
 0x24c   :  { %918 = vst [vmem:[#allocation8 + $0x8] sm:$0xff] %v914_v10 }
 0x24d   :  { %1305 = shalt.err (!%p1302_p0)
}
 0x24e   :  { %s1306_s12 = scalar_lea.hbm %s1429_s5, 256 }
 0x24f   :  { %p1307_p1 = scmp.ne.s32.totalorder %s1429_s5, %s1306_s12  ;;  %p1310_p2 = scmp.lt.u32.totalorder %s1306_s12, %s1429_s5 }
 0x251   :  { %p1312_p3 = pnand %p1310_p2, %p1307_p1 }
 0x253   :  { %1315 = shalt.err (!%p1312_p3)
}
 0x254   :  { %s1332_s1 = smov 128   ;;  %s1333_s17 = smov 8  }
 0x255   :  { %930 = dma.vmem_to_hbm [thread:$0]  %s925_s9, 256, %s1429_s5, [#allocation4], %s1332_s1, %s1332_s1, %s1333_s17  }
 0x256   :  { %1320 = dma.done.wait [#allocation4], 256  }
 0x257   :  { %1321 = vsyncadd [#allocation4], 4294967040 }
 0x258   :  { %934 = vsyncpa [#allocation3], 1 }
 0x259   :  { %935 = vsyncpa [#allocation6], 1 }
 0x25a   :  { %936 = vsyncpa [#allocation4], 1 }

</bundles_post_ra>
